<compile_context>
chip_gen: v5e
topology: v5e:2x2
jax: 0.10.0
libtpu: 0.0.40
codegen_flags: <defaults>
</compile_context>

<pallas_src>
import jax
import jax.numpy as jnp
from jax.experimental import pallas as pl
from jax.experimental.pallas import tpu as pltpu

_LANE = 128      # vreg lane width
_SUBLANE = 8     # f32 sublane height


def _round_up(x, m):
    return ((x + m - 1) // m) * m


def q_function_kernel(x_ref, w1_ref, b1_ref, w2_ref, b2_ref, w3_ref, b3_ref,
                      o_ref):
    # Cast in-kernel (no-op when the wrapper already produced an MXU-dtype copy).
    x = x_ref[...].astype(w1_ref.dtype)

    # Layer 1: Linear + ReLU (MXU dot with f32 accumulation; bias add / ReLU
    # stay in f32 -- v5e's VPU has no bf16 path).
    h1 = jnp.dot(x, w1_ref[...], preferred_element_type=jnp.float32)
    h1 = jnp.maximum(h1 + b1_ref[...], 0.0)
    # Dropout(0.3): identity in eval mode.

    # Layer 2: Linear + ReLU.
    h2 = jnp.dot(h1.astype(w2_ref.dtype), w2_ref[...],
                 preferred_element_type=jnp.float32)
    h2 = jnp.maximum(h2 + b2_ref[...], 0.0)
    # Dropout(0.3): identity in eval mode.

    # Layer 3: Linear(n_hid, 1) + b3 (SMEM scalar). Output block is
    # (block_b, 1); the few masked stores are free under the DMA bottleneck.
    out = jnp.dot(h2.astype(w3_ref.dtype), w3_ref[...],
                  preferred_element_type=jnp.float32)
    o_ref[...] = (out + b3_ref[0]).astype(o_ref.dtype)


def prepare_params(w1, b1, w2, b2, w3, b3, *, mxu_dtype=jnp.bfloat16):
    """Pad/cast parameters ONCE (lane-aligned, MXU dtype).

    Weights are (in_features, out_features), i.e. transposed vs. torch. Zero
    padding contributes nothing to the dots and stays 0 through bias+ReLU.
    Call this outside the per-step forward so pad/convert ops don't rerun.
    """
    n_feat, n_hid = w1.shape
    F = _round_up(n_feat, _LANE)
    H = _round_up(n_hid, _LANE)
    w1p = jnp.zeros((F, H), mxu_dtype).at[:n_feat, :n_hid].set(w1.astype(mxu_dtype))
    w2p = jnp.zeros((H, H), mxu_dtype).at[:n_hid, :n_hid].set(w2.astype(mxu_dtype))
    w3p = jnp.zeros((H, 1), mxu_dtype).at[:n_hid, :].set(
        jnp.asarray(w3, mxu_dtype).reshape(n_hid, 1))
    b1p = jnp.zeros((1, H), jnp.float32).at[:, :n_hid].set(
        jnp.asarray(b1, jnp.float32).reshape(1, n_hid))
    b2p = jnp.zeros((1, H), jnp.float32).at[:, :n_hid].set(
        jnp.asarray(b2, jnp.float32).reshape(1, n_hid))
    b3p = jnp.asarray(b3, jnp.float32).reshape(1,)
    return (w1p, b1p, w2p, b2p, w3p, b3p)


def q_function_forward(x, params, *, block_b=512):
    """y = Linear3(ReLU(Linear2(ReLU(Linear1(x)))))  (dropout = identity)."""
    w1p, b1p, w2p, b2p, w3p, b3p = params
    B, n_feat = x.shape
    F, H = w1p.shape
    out_dtype = x.dtype
    mxu_dtype = w1p.dtype

    # --- batch tile sizing ---------------------------------------------------
    b_aligned = _round_up(B, _SUBLANE)
    block_b = max(_SUBLANE, _round_up(min(block_b, b_aligned), _SUBLANE))
    # Give v7x's second TensorCore work when the batch allows >= 2 tiles
    # (costs nothing on single-TC v5e/v6e).
    if b_aligned >= 2 * _SUBLANE and b_aligned // block_b < 2:
        block_b = _round_up((b_aligned + 1) // 2, _SUBLANE)
    B_pad = _round_up(B, block_b)
    grid = (B_pad // block_b,)

    # --- activations: pad/cast only when shapes actually require it ----------
    if B_pad == B and F == n_feat:
        xp = x  # no extra HBM pass; cast happens inside the kernel
    else:
        xp = jnp.zeros((B_pad, F), mxu_dtype).at[:B, :n_feat].set(
            x.astype(mxu_dtype))

    # --- VMEM budget (generation-aware cap) -----------------------------------
    w_sz = jnp.dtype(mxu_dtype).itemsize
    x_sz = jnp.dtype(xp.dtype).itemsize
    o_sz = jnp.dtype(out_dtype).itemsize
    budget = 2 * block_b * F * x_sz             # x tile, double-buffered
    budget += (F * H + H * H + H) * w_sz        # resident weights, single-buffered
    budget += 2 * H * 4                         # biases, single-buffered
    budget += 2 * block_b * o_sz                # out tile, double-buffered
    budget += 3 * block_b * H * 4               # live f32 h1/h2 + bf16 casts
    budget = int(budget * 1.5)                  # compiler-internal headroom
    try:
        vmem_cap = int(pltpu.get_tpu_info().vmem_capacity_bytes)
    except Exception:
        vmem_cap = 64 << 20                     # conservative fallback (v7x per-TC)
    if budget <= (32 << 20):
        vmem_limit = None                       # default scoped limit is enough
    else:
        vmem_limit = min(budget, int(vmem_cap * 0.85))

    resident = lambda i: (0, 0)
    single = pl.Buffered(1)  # constant index_map -> never re-DMA'd; 1 buffer

    out = pl.pallas_call(
        q_function_kernel,
        out_shape=jax.ShapeDtypeStruct((B_pad, 1), out_dtype),
        grid_spec=pltpu.PrefetchScalarGridSpec(
            num_scalar_prefetch=0,
            grid=grid,
            in_specs=[
                # batch-tiled activations
                pl.BlockSpec((block_b, F), lambda i: (i, 0)),
                # weights / biases: resident, single-buffered
                pl.BlockSpec((F, H), resident, pipeline_mode=single),
                pl.BlockSpec((1, H), resident, pipeline_mode=single),
                pl.BlockSpec((H, H), resident, pipeline_mode=single),
                pl.BlockSpec((1, H), resident, pipeline_mode=single),
                pl.BlockSpec((H, 1), resident, pipeline_mode=single),
                # b3 scalar in SMEM
                pl.BlockSpec(memory_space=pltpu.MemorySpace.SMEM),
            ],
            out_specs=pl.BlockSpec((block_b, 1), lambda i: (i, 0)),
        ),
        compiler_params=pltpu.CompilerParams(
            dimension_semantics=("parallel",),
            vmem_limit_bytes=vmem_limit,
        ),
    )(xp, w1p, b1p, w2p, b2p, w3p, b3p)

    return out if B_pad == B else out[:B]


def init_params(key, n_feat, n_hid, dtype=jnp.float32):
    """Deterministic PyTorch-style Linear init: U(-1/sqrt(fan_in), 1/sqrt(fan_in))."""
    ks = jax.random.split(key, 6)

    def lin(kw, kb, fan_in, fan_out):
        bound = 1.0 / jnp.sqrt(fan_in)
        w = jax.random.uniform(kw, (fan_in, fan_out), dtype, -bound, bound)
        b = jax.random.uniform(kb, (1, fan_out), dtype, -bound, bound)
        return w, b

    w1, b1 = lin(ks[0], ks[1], n_feat, n_hid)
    w2, b2 = lin(ks[2], ks[3], n_hid, n_hid)
    w3, b3 = lin(ks[4], ks[5], n_hid, 1)
    return w1, b1, w2, b2, w3, b3


if __name__ == "__main__":
    key = jax.random.PRNGKey(0)
    k_x, k_p = jax.random.split(key)

    batch, n_feat, n_hid = 8, 32, 32
    x = jax.random.normal(k_x, (batch, n_feat), jnp.float32)
    w1, b1, w2, b2, w3, b3 = init_params(k_p, n_feat, n_hid)

    # Plain-JAX f32 reference (eval-mode dropout == identity).
    h1 = jnp.maximum(x @ w1 + b1, 0.0)
    h2 = jnp.maximum(h1 @ w2 + b2, 0.0)
    ref = h2 @ w3 + b3

    # Exact-precision debug path (f32 on the MXU): tight check.
    params_f32 = prepare_params(w1, b1, w2, b2, w3, b3, mxu_dtype=jnp.float32)
    out_f32 = jax.block_until_ready(q_function_forward(x, params_f32))
    assert out_f32.shape == (batch, 1)
    assert jnp.allclose(out_f32, ref, atol=1e-4, rtol=1e-4)

    # Production path (bf16 MXU inputs, f32 accumulation): loose check.
    params_bf16 = prepare_params(w1, b1, w2, b2, w3, b3, mxu_dtype=jnp.bfloat16)
    out_bf16 = jax.block_until_ready(q_function_forward(x, params_bf16))
    assert out_bf16.shape == (batch, 1)
    assert jnp.allclose(out_bf16, ref, atol=5e-2, rtol=5e-2)

    print("KERNEL_OK")
</pallas_src>

<mosaic_0001>
module attributes {stable_mosaic.version = 11 : i64} {
  func.func @q_function_kernel(%arg0: i32, %arg1: memref<8x128xf32, #tpu.memory_space<vmem>>, %arg2: memref<128x128xf32, #tpu.memory_space<vmem>>, %arg3: memref<1x128xf32, #tpu.memory_space<vmem>>, %arg4: memref<128x128xf32, #tpu.memory_space<vmem>>, %arg5: memref<1x128xf32, #tpu.memory_space<vmem>>, %arg6: memref<128x1xf32, #tpu.memory_space<vmem>>, %arg7: memref<1xf32, #tpu.memory_space<smem>>, %arg8: memref<8x1xf32, #tpu.memory_space<vmem>>) attributes {dimension_semantics = [#tpu.dimension_semantics<parallel>], iteration_bounds = array<i64: 1>, scalar_prefetch = 0 : i64, scratch_operands = 0 : i64, tpu.core_type = #tpu.core_type<tc>, window_params = [{transform_indices = @transform_0, window_bounds = array<i64: 8, 128>}, {pipeline_mode = #tpu.pipeline_mode<synchronous>, transform_indices = @transform_1, window_bounds = array<i64: 128, 128>}, {pipeline_mode = #tpu.pipeline_mode<synchronous>, transform_indices = @transform_2, window_bounds = array<i64: 1, 128>}, {pipeline_mode = #tpu.pipeline_mode<synchronous>, transform_indices = @transform_3, window_bounds = array<i64: 128, 128>}, {pipeline_mode = #tpu.pipeline_mode<synchronous>, transform_indices = @transform_4, window_bounds = array<i64: 1, 128>}, {pipeline_mode = #tpu.pipeline_mode<synchronous>, transform_indices = @transform_5, window_bounds = array<i64: 128, 1>}, {transform_indices = @transform_6, window_bounds = array<i64: 1>}, {transform_indices = @transform_7, window_bounds = array<i64: 8, 1>}]} {
    %c0 = arith.constant 0 : index
    %c0_0 = arith.constant 0 : index
    %0 = vector.load %arg1[%c0, %c0_0] : memref<8x128xf32, #tpu.memory_space<vmem>>, vector<8x128xf32>
    %c0_1 = arith.constant 0 : index
    %c0_2 = arith.constant 0 : index
    %1 = vector.load %arg2[%c0_1, %c0_2] : memref<128x128xf32, #tpu.memory_space<vmem>>, vector<128x128xf32>
    %cst = arith.constant dense<0.000000e+00> : vector<8x128xf32>
    %2 = tpu.matmul %0, %1, %cst {dimension_numbers = #tpu.dot_dimension_numbers<[1], [0], [0], [1], [0, 0, 1, 1], [], []>} : vector<8x128xf32>, vector<128x128xf32>, vector<8x128xf32> -> vector<8x128xf32>
    %c0_3 = arith.constant 0 : index
    %c0_4 = arith.constant 0 : index
    %3 = vector.load %arg3[%c0_3, %c0_4] : memref<1x128xf32, #tpu.memory_space<vmem>>, vector<1x128xf32>
    %4 = vector.broadcast %3 : vector<1x128xf32> to vector<8x128xf32>
    %5 = arith.addf %2, %4 : vector<8x128xf32>
    %cst_5 = arith.constant 0.000000e+00 : f32
    %6 = vector.broadcast %cst_5 : f32 to vector<8x128xf32>
    %7 = arith.maximumf %5, %6 : vector<8x128xf32>
    %c0_6 = arith.constant 0 : index
    %c0_7 = arith.constant 0 : index
    %8 = vector.load %arg4[%c0_6, %c0_7] : memref<128x128xf32, #tpu.memory_space<vmem>>, vector<128x128xf32>
    %cst_8 = arith.constant dense<0.000000e+00> : vector<8x128xf32>
    %9 = tpu.matmul %7, %8, %cst_8 {dimension_numbers = #tpu.dot_dimension_numbers<[1], [0], [0], [1], [0, 0, 1, 1], [], []>} : vector<8x128xf32>, vector<128x128xf32>, vector<8x128xf32> -> vector<8x128xf32>
    %c0_9 = arith.constant 0 : index
    %c0_10 = arith.constant 0 : index
    %10 = vector.load %arg5[%c0_9, %c0_10] : memref<1x128xf32, #tpu.memory_space<vmem>>, vector<1x128xf32>
    %11 = vector.broadcast %10 : vector<1x128xf32> to vector<8x128xf32>
    %12 = arith.addf %9, %11 : vector<8x128xf32>
    %cst_11 = arith.constant 0.000000e+00 : f32
    %13 = vector.broadcast %cst_11 : f32 to vector<8x128xf32>
    %14 = arith.maximumf %12, %13 : vector<8x128xf32>
    %c0_12 = arith.constant 0 : index
    %c0_13 = arith.constant 0 : index
    %15 = vector.load %arg6[%c0_12, %c0_13] : memref<128x1xf32, #tpu.memory_space<vmem>>, vector<128x1xf32>
    %cst_14 = arith.constant dense<0.000000e+00> : vector<8x1xf32>
    %16 = tpu.matmul %14, %15, %cst_14 {dimension_numbers = #tpu.dot_dimension_numbers<[1], [0], [0], [1], [0, 0, 1, 1], [], []>} : vector<8x128xf32>, vector<128x1xf32>, vector<8x1xf32> -> vector<8x1xf32>
    %c0_15 = arith.constant 0 : index
    %17 = memref.load %arg7[%c0_15] : memref<1xf32, #tpu.memory_space<smem>>
    %18 = vector.broadcast %17 : f32 to vector<8x1xf32>
    %19 = arith.addf %16, %18 : vector<8x1xf32>
    %c0_16 = arith.constant 0 : index
    %c0_17 = arith.constant 0 : index
    %20 = vector.load %arg8[%c0_16, %c0_17] : memref<8x1xf32, #tpu.memory_space<vmem>>, vector<8x1xf32>
    tpu.vector_store %arg8[%c0_16, %c0_17], %19 {strides = array<i32>} : memref<8x1xf32, #tpu.memory_space<vmem>>, vector<8x1xf32>,
    return
  }
  func.func @transform_0(%arg0: i32) -> (i32, i32) {
    %c0_i32 = arith.constant 0 : i32
    %c0_i32_0 = arith.constant 0 : i32
    return %arg0, %c0_i32 : i32, i32
  }
  func.func @transform_1(%arg0: i32) -> (i32, i32) {
    %c0_i32 = arith.constant 0 : i32
    %c0_i32_0 = arith.constant 0 : i32
    %c0_i32_1 = arith.constant 0 : i32
    return %c0_i32, %c0_i32_0 : i32, i32
  }
  func.func @transform_2(%arg0: i32) -> (i32, i32) {
    %c0_i32 = arith.constant 0 : i32
    %c0_i32_0 = arith.constant 0 : i32
    %c0_i32_1 = arith.constant 0 : i32
    return %c0_i32, %c0_i32_0 : i32, i32
  }
  func.func @transform_3(%arg0: i32) -> (i32, i32) {
    %c0_i32 = arith.constant 0 : i32
    %c0_i32_0 = arith.constant 0 : i32
    %c0_i32_1 = arith.constant 0 : i32
    return %c0_i32, %c0_i32_0 : i32, i32
  }
  func.func @transform_4(%arg0: i32) -> (i32, i32) {
    %c0_i32 = arith.constant 0 : i32
    %c0_i32_0 = arith.constant 0 : i32
    %c0_i32_1 = arith.constant 0 : i32
    return %c0_i32, %c0_i32_0 : i32, i32
  }
  func.func @transform_5(%arg0: i32) -> (i32, i32) {
    %c0_i32 = arith.constant 0 : i32
    %c0_i32_0 = arith.constant 0 : i32
    %c0_i32_1 = arith.constant 0 : i32
    return %c0_i32, %c0_i32_0 : i32, i32
  }
  func.func @transform_6(%arg0: i32) -> i32 {
    %c0_i32 = arith.constant 0 : i32
    %c0_i32_0 = arith.constant 0 : i32
    return %c0_i32 : i32
  }
  func.func @transform_7(%arg0: i32) -> (i32, i32) {
    %c0_i32 = arith.constant 0 : i32
    %c0_i32_0 = arith.constant 0 : i32
    return %arg0, %c0_i32 : i32, i32
  }
}

</mosaic_0001>

<bundles_post_ra>
// kernel: tpu_custom_call.1
= control target key start
LH: loop header
LB: loop body
LE: loop exit
PB: predicated region body
PF: predicated region fallthrough
CT: control target
= control target key end

     0   :  { %13 = vsyncpa [#allocation4], 0  ;;  %s402_s0 = inlined_call_operand.hbm [shape: f32[8,128], index: 0, kind: input, shape index: {}]   ;;  %s403_s1 = inlined_call_operand.vmem [shape: f32[128,128], index: 1, kind: input, shape index: {}]   ;;  %s404_s2 = inlined_call_operand.vmem [shape: f32[1,128], index: 2, kind: input, shape index: {}]   ;;  %s405_s3 = inlined_call_operand.hbm [shape: f32[128,128], index: 3, kind: input, shape index: {}]   ;;  %s406_s4 = inlined_call_operand.vmem [shape: f32[1,128], index: 4, kind: input, shape index: {}]   ;;  %s407_s5 = inlined_call_operand.vmem [shape: f32[128,1], index: 5, kind: input, shape index: {}]   ;;  %s408_s6 = inlined_call_operand.<no memory space> [shape: f32[1], index: 6, kind: input, shape index: {}]   ;;  %s409_s7 = inlined_call_operand.vmem [shape: f32[8,1], index: 7, kind: output, shape index: {}]  }
   0x1   :  { %s20_s26 = sshll.u32 %s402_s0, 4  ;;  %s21_s26 = int_to_ptr.hbm [resolvable:$true] %s20_s26 }
   0x2   :  { %14 = vsyncpa [#allocation6], 0  ;;  %s244_s27 = smov [#allocation3]   ;;  %s34_s8 = sshll.u32 %s405_s3, 4  ;;  %s35_s8 = int_to_ptr.hbm [resolvable:$true] %s34_s8 }
   0x3   :  { %s22_s28 = sshll.u32 %s244_s27, 4  ;;  %s245_s9 = smov [#allocation5]   ;;  %s23_s28 = int_to_ptr.vmem [resolvable:$true] %s22_s28 }
   0x4   :  { %25 = dma.hbm_to_vmem [thread:$0]  %s21_s26, 128, %s23_s28, [#allocation4]  }
   0x5   :  { %s36_s10 = sshll.u32 %s245_s9, 4  ;;  %s246_s11 = smov 128   ;;  %s37_s10 = int_to_ptr.vmem [resolvable:$true] %s36_s10 }
   0x6   :  { %s247_s12 = smov 8  }
   0x7   :  { %42 = dma.hbm_to_vmem [thread:$0]  %s35_s8, 2048, %s37_s10, [#allocation6], %s246_s11, %s246_s11, %s247_s12  }
   0x8   :  { %240 = dma.done.wait [#allocation4], 128  }
   0x9   :  { %241 = vsyncadd [#allocation4], 4294967168 }
   0xa   :  { %242 = dma.done.wait [#allocation6], 2048  }
   0xb   :  { %243 = vsyncadd [#allocation6], 4294965248  ;;  %v73_v0 = vld [vmem:[%s403_s1 + $0x78] sm:$0xff]  ;;  %v72_v1 = vld [vmem:[%s403_s1 + $0x70] sm:$0xff]  ;;  %v157_v57 = vstv %s408_s6  ;;  %vm178_vm0 = vcmask 7168  }
   0xc   :  { %78 = vmatpush.msra.mxu0 %v73_v0  ;;  %v71_v2 = vld [vmem:[%s403_s1 + $0x68] sm:$0xff]  ;;  %v70_v3 = vld [vmem:[%s403_s1 + $0x60] sm:$0xff]  ;;  %v69_v5 = vld [vmem:[%s403_s1 + $0x58] sm:$0xff] }
   0xd   :  { %v114_v4 = vld [vmem:[#allocation5 + $0x78] sm:$0xff]  ;;  %v113_v6 = vld [vmem:[#allocation5 + $0x70] sm:$0xff]  ;;  %v112_v7 = vld [vmem:[#allocation5 + $0x68] sm:$0xff] }
   0xe   :  { %79 = vmatpush.msra.mxu0 %v72_v1  ;;  %119 = vmatpush.msra.mxu1 %v114_v4  ;;  %v68_v8 = vld [vmem:[%s403_s1 + $0x50] sm:$0xff]  ;;  %v111_v9 = vld [vmem:[#allocation5 + $0x60] sm:$0xff]  ;;  %v110_v11 = vld [vmem:[#allocation5 + $0x58] sm:$0xff] }
   0xf   :  { %v67_v10 = vld [vmem:[%s403_s1 + $0x48] sm:$0xff]  ;;  %v66_v12 = vld [vmem:[%s403_s1 + $0x40] sm:$0xff]  ;;  %v109_v13 = vld [vmem:[#allocation5 + $0x50] sm:$0xff] }
  0x10   :  { %80 = vmatpush.msra.mxu0 %v71_v2  ;;  %120 = vmatpush.msra.mxu1 %v113_v6  ;;  %v65_v14 = vld [vmem:[%s403_s1 + $0x38] sm:$0xff]  ;;  %v108_v15 = vld [vmem:[#allocation5 + $0x48] sm:$0xff]  ;;  %v107_v17 = vld [vmem:[#allocation5 + $0x40] sm:$0xff] }
  0x11   :  { %v64_v16 = vld [vmem:[%s403_s1 + $0x30] sm:$0xff]  ;;  %v63_v18 = vld [vmem:[%s403_s1 + $0x28] sm:$0xff]  ;;  %v106_v19 = vld [vmem:[#allocation5 + $0x38] sm:$0xff] }
  0x12   :  { %81 = vmatpush.msra.mxu0 %v70_v3  ;;  %121 = vmatpush.msra.mxu1 %v112_v7  ;;  %v62_v20 = vld [vmem:[%s403_s1 + $0x20] sm:$0xff]  ;;  %v105_v21 = vld [vmem:[#allocation5 + $0x30] sm:$0xff]  ;;  %v104_v23 = vld [vmem:[#allocation5 + $0x28] sm:$0xff] }
  0x13   :  { %v61_v22 = vld [vmem:[%s403_s1 + $0x18] sm:$0xff]  ;;  %v60_v24 = vld [vmem:[%s403_s1 + $0x10] sm:$0xff]  ;;  %v103_v25 = vld [vmem:[#allocation5 + $0x20] sm:$0xff] }
  0x14   :  { %82 = vmatpush.msra.mxu0 %v69_v5  ;;  %122 = vmatpush.msra.mxu1 %v111_v9  ;;  %v59_v26 = vld [vmem:[%s403_s1 + $0x8] sm:$0xff]  ;;  %v102_v27 = vld [vmem:[#allocation5 + $0x18] sm:$0xff]  ;;  %v101_v30 = vld [vmem:[#allocation5 + $0x10] sm:$0xff] }
  0x15   :  { %v58_v28 = vld [vmem:[%s403_s1] sm:$0xff]  ;;  %v100_v31 = vld [vmem:[#allocation5 + $0x8] sm:$0xff]  ;;  %v99_v32 = vld [vmem:[#allocation5] sm:$0xff] }
  0x16   :  { %83 = vmatpush.msra.mxu0 %v68_v8  ;;  %123 = vmatpush.msra.mxu1 %v110_v11  ;;  %v57_v29 = vld [vmem:[#allocation3] sm:$0xff]  ;;  %v155_v33 = vld [vmem:[%s407_s5 + $0x78] sm:$0xff]  ;;  %v154_v34 = vld [vmem:[%s407_s5 + $0x70] sm:$0xff] }
  0x17   :  { %158 = vmatpush.msra.mxu2 %v155_v33  ;;  %v153_v35 = vld [vmem:[%s407_s5 + $0x68] sm:$0xff]  ;;  %v152_v36 = vld [vmem:[%s407_s5 + $0x60] sm:$0xff]  ;;  %v151_v37 = vld [vmem:[%s407_s5 + $0x58] sm:$0xff] }
  0x18   :  { %84 = vmatpush.msra.mxu0 %v67_v10  ;;  %124 = vmatpush.msra.mxu1 %v109_v13  ;;  %v150_v38 = vld [vmem:[%s407_s5 + $0x50] sm:$0xff]  ;;  %v149_v39 = vld [vmem:[%s407_s5 + $0x48] sm:$0xff]  ;;  %v148_v40 = vld [vmem:[%s407_s5 + $0x40] sm:$0xff] }
  0x19   :  { %159 = vmatpush.msra.mxu2 %v154_v34  ;;  %v147_v41 = vld [vmem:[%s407_s5 + $0x38] sm:$0xff]  ;;  %v146_v42 = vld [vmem:[%s407_s5 + $0x30] sm:$0xff]  ;;  %v145_v43 = vld [vmem:[%s407_s5 + $0x28] sm:$0xff] }
  0x1a   :  { %85 = vmatpush.msra.mxu0 %v66_v12  ;;  %125 = vmatpush.msra.mxu1 %v108_v15  ;;  %v144_v44 = vld [vmem:[%s407_s5 + $0x20] sm:$0xff]  ;;  %v143_v45 = vld [vmem:[%s407_s5 + $0x18] sm:$0xff]  ;;  %v142_v50 = vld [vmem:[%s407_s5 + $0x10] sm:$0xff] }
  0x1b   :  { %160 = vmatpush.msra.mxu2 %v153_v35  ;;  %v190_v46 = vld [vmem:[%s404_s2] ss:$0 sm:$0xff]  ;;  %v141_v51 = vld [vmem:[%s407_s5 + $0x8] sm:$0xff] }
  0x1c   :  { %86 = vmatpush.msra.mxu0 %v65_v14  ;;  %126 = vmatpush.msra.mxu1 %v107_v17  ;;  %v140_v52 = vld [vmem:[%s407_s5] sm:$0xff] }
  0x1d   :  { %161 = vmatpush.msra.mxu2 %v152_v36  ;;  %v191_v53 = vld [vmem:[%s406_s4] ss:$0 sm:$0xff] }
  0x1e   :  { %87 = vmatpush.msra.mxu0 %v64_v16  ;;  %127 = vmatpush.msra.mxu1 %v106_v19 }
  0x1f   :  { %162 = vmatpush.msra.mxu2 %v151_v37 }
  0x20   :  { %88 = vmatpush.msra.mxu0 %v63_v18  ;;  %128 = vmatpush.msra.mxu1 %v105_v21 }
  0x21   :  { %163 = vmatpush.msra.mxu2 %v150_v38 }
  0x22   :  { %89 = vmatpush.msra.mxu0 %v62_v20  ;;  %129 = vmatpush.msra.mxu1 %v104_v23 }
  0x23   :  { %164 = vmatpush.msra.mxu2 %v149_v39 }
  0x24   :  { %90 = vmatpush.msra.mxu0 %v61_v22  ;;  %130 = vmatpush.msra.mxu1 %v103_v25 }
  0x25   :  { %165 = vmatpush.msra.mxu2 %v148_v40 }
  0x26   :  { %91 = vmatpush.msra.mxu0 %v60_v24  ;;  %131 = vmatpush.msra.mxu1 %v102_v27 }
  0x27   :  { %166 = vmatpush.msra.mxu2 %v147_v41 }
  0x28   :  { %92 = vmatpush.msra.mxu0 %v59_v26  ;;  %132 = vmatpush.msra.mxu1 %v101_v30 }
  0x29   :  { %167 = vmatpush.msra.mxu2 %v146_v42 }
  0x2a   :  { %93 = vmatpush.msra.mxu0 %v58_v28  ;;  %133 = vmatpush.msra.mxu1 %v100_v31 }
  0x2b   :  { %94 = vmatmul.f32.vlgmr.msra.gmra.mxu0 %v57_v29  ;;  %168 = vmatpush.msra.mxu2 %v145_v43 }
  0x2c   :  { %134 = vmatpush.msra.mxu1 %v99_v32 }
  0x2d   :  { %169 = vmatpush.msra.mxu2 %v144_v44 }
  0x2f   :  { %170 = vmatpush.msra.mxu2 %v143_v45 }
  0x31   :  { %171 = vmatpush.msra.mxu2 %v142_v50 }
  0x33   :  { %172 = vmatpush.msra.mxu2 %v141_v51 }
  0x35   :  { %173 = vmatpush.msra.mxu2 %v140_v52 }
  0xa8   :  { %v95_v47 = vpop.f32.mrf.mxu0 }
  0xa9   :  { %v96_v48 = vadd.f32 %v190_v46, %v95_v47 }
  0xab   :  { %v98_v49 = vmax.f32 %v96_v48, 0.0 }
  0xad   :  { %135 = vmatmul.f32.vlgmr.msra.gmra.mxu1 %v98_v49 }
 0x12a   :  { %v136_v54 = vpop.f32.mrf.mxu1 }
 0x12b   :  { %v137_v55 = vadd.f32 %v191_v53, %v136_v54 }
 0x12d   :  { %v139_v56 = vmax.f32 %v137_v55, 0.0 }
 0x12f   :  { %174 = vmatmul.f32.vlgmr.msra.gmra.mxu2 %v139_v56 }
 0x1b2   :  { %v175_v58 = vpop.f32.mrf.mxu2 }
 0x1b3   :  { %v176_v59 = vadd.f32 %v175_v58, %v157_v57 }
 0x1b5   :  { %179 = vst.msk [vmem:[%s409_s7] sm:$0xff] %vm178_vm0, %v176_v59 }
 0x1b6   :  { %184 = vsyncpa [#allocation4], 1 }
 0x1b7   :  { %185 = vsyncpa [#allocation6], 1 }

</bundles_post_ra>
